<compile_context>
chip_gen: v6e
topology: v6e:2x2x1
jax: 0.10.0
libtpu: 0.0.40
codegen_flags: <defaults>
</compile_context>

<pallas_src>
import functools

import jax
import jax.numpy as jnp
from jax.experimental import pallas as pl
from jax.experimental.pallas import tpu as pltpu

FEAT = 512            # backbone feature width (resnet -> (B, 512, 1, 1))
NUM_CLASSES = 10      # nn.Linear(512, 10)
PADDED_CLASSES = 128  # lane-dense padded output width


def _round_up(v, m):
    return ((v + m - 1) // m) * m


# ---------------------------------------------------------------------------
# Kernels
# ---------------------------------------------------------------------------
def transfer_kernel_fused(x_ref, w_big_ref, b_feat_ref, w_fc_ref, b_fc_ref,
                          o_ref):
    """Average pool folded into the first contraction (best on v6e/v7x).

    x_ref      : (TB, C*HW)  f32   (cast to bf16 in-kernel)
    w_big_ref  : (C*HW, 512) bf16  (W_big[c*HW + s, f] = w_feat[c, f] / HW)
    b_feat_ref : (1, 512)    f32
    w_fc_ref   : (512, 128)  bf16  (cols 10..127 zero)
    b_fc_ref   : (1, 128)    f32   (cols 10..127 zero)
    o_ref      : (TB, 128)   f32 or bf16
    """
    x_bf = x_ref[...].astype(jnp.bfloat16)           # in-kernel cast: bf16 MXU rate
    feat = jnp.dot(x_bf, w_big_ref[...],
                   preferred_element_type=jnp.float32)          # (TB, 512) f32
    feat = jnp.maximum(feat + b_feat_ref[...], 0.0)             # f32 VPU epilogue
    out = jnp.dot(feat.astype(jnp.bfloat16), w_fc_ref[...],
                  preferred_element_type=jnp.float32)           # (TB, 128) f32
    o_ref[...] = (out + b_fc_ref[...]).astype(o_ref.dtype)


def transfer_kernel_unfused(x_ref, w_feat_ref, b_feat_ref, w_fc_ref, b_fc_ref,
                            o_ref, *, hw, c):
    """Pool as XLU lane reductions + K=C matmul (preferred on v5e).

    x_ref      : (TB, C*HW)  f32
    w_feat_ref : (C, 512)    bf16
    (rest as in the fused kernel)
    """
    x = x_ref[...]                                               # (TB, C*HW) f32
    pooled = jnp.concatenate(
        [jnp.sum(x[:, i * hw:(i + 1) * hw], axis=-1, keepdims=True)
         for i in range(c)],
        axis=-1) * (1.0 / hw)                                    # (TB, C) f32 (XLU)
    feat = jnp.dot(pooled.astype(jnp.bfloat16), w_feat_ref[...],
                   preferred_element_type=jnp.float32)           # K=C matmul
    feat = jnp.maximum(feat + b_feat_ref[...], 0.0)
    out = jnp.dot(feat.astype(jnp.bfloat16), w_fc_ref[...],
                  preferred_element_type=jnp.float32)
    o_ref[...] = (out + b_fc_ref[...]).astype(o_ref.dtype)


# ---------------------------------------------------------------------------
# One-time weight preparation (hoisted out of the forward path)
# ---------------------------------------------------------------------------
def prepare_transfer_params(w_feat, b_feat, w_fc, b_fc, hw, *, fold_pool=True,
                            weight_dtype=jnp.bfloat16):
    """Precompute kernel-ready weights once; reuse across forward calls."""
    c = w_feat.shape[0]
    if fold_pool:
        # Fold the 1/HW average pool into the first projection (K = C*HW).
        w0 = (jnp.repeat(w_feat.astype(jnp.float32), hw, axis=0)
              * (1.0 / hw)).astype(weight_dtype)                 # (C*HW, 512)
    else:
        w0 = w_feat.astype(weight_dtype)                         # (C, 512)

    w_fc_pad = jnp.zeros((FEAT, PADDED_CLASSES), jnp.float32)
    w_fc_pad = w_fc_pad.at[:, :NUM_CLASSES].set(w_fc).astype(weight_dtype)
    b_fc_pad = jnp.zeros((1, PADDED_CLASSES), jnp.float32)
    b_fc_pad = b_fc_pad.at[:, :NUM_CLASSES].set(b_fc.reshape(1, NUM_CLASSES))
    b_feat2 = b_feat.reshape(1, FEAT).astype(jnp.float32)

    return dict(fold_pool=fold_pool, hw=hw, c=c, w0=w0,
                b_feat=b_feat2, w_fc=w_fc_pad, b_fc=b_fc_pad)


# ---------------------------------------------------------------------------
# Forward
# ---------------------------------------------------------------------------
def transfer_net_forward(x_nchw, params, *, tb=512, out_dtype=jnp.float32,
                         split_min=256):
    """x_nchw: (B, C, H, W) f32 -> logits (B, 10) in out_dtype."""
    B, C, H, W = x_nchw.shape
    hw = H * W
    assert hw == params["hw"] and C == params["c"], "params prepared for other shape"
    chw = C * hw
    x2 = x_nchw.reshape(B, chw)          # free row-major reshape; no pad copy

    # ---- adaptive batch tiling (no 128-row zero pad, no padded x copy) -----
    if B <= tb:
        if B >= split_min:
            # >=2 "parallel" grid steps so both v7x TensorCores get work.
            tb_eff = _round_up(-(-B // 2), 8)
        else:
            tb_eff = B                   # single full-batch (full-dim) block
    else:
        tb_eff = tb                      # trailing partial block is masked
    grid = (pl.cdiv(B, tb_eff),)

    w0 = params["w0"]
    k0 = w0.shape[0]                     # C*HW (fused) or C (unfused)
    if params["fold_pool"]:
        kernel = transfer_kernel_fused
    else:
        kernel = functools.partial(transfer_kernel_unfused, hw=hw, c=C)

    out_padded = pl.pallas_call(
        kernel,
        out_shape=jax.ShapeDtypeStruct((B, PADDED_CLASSES), out_dtype),
        grid=grid,
        in_specs=[
            pl.BlockSpec((tb_eff, chw), lambda i: (i, 0)),        # x tile (pipelined)
            pl.BlockSpec((k0, FEAT), lambda i: (0, 0)),           # weights (resident)
            pl.BlockSpec((1, FEAT), lambda i: (0, 0)),            # b_feat
            pl.BlockSpec((FEAT, PADDED_CLASSES), lambda i: (0, 0)),  # w_fc (resident)
            pl.BlockSpec((1, PADDED_CLASSES), lambda i: (0, 0)),  # b_fc
        ],
        out_specs=pl.BlockSpec((tb_eff, PADDED_CLASSES), lambda i: (i, 0)),
        compiler_params=pltpu.CompilerParams(
            dimension_semantics=("parallel",)),
    )(x2, w0, params["b_feat"], params["w_fc"], params["b_fc"])

    return out_padded[:, :NUM_CLASSES]


# ---------------------------------------------------------------------------
# Pure-JAX f32 reference
# ---------------------------------------------------------------------------
def reference_forward(x_nchw, w_feat, b_feat, w_fc, b_fc):
    B, C, H, W = x_nchw.shape
    pooled = jnp.mean(x_nchw.reshape(B, C, H * W), axis=-1)
    feat = jnp.maximum(pooled @ w_feat + b_feat.reshape(1, FEAT), 0.0)
    return feat @ w_fc + b_fc.reshape(1, NUM_CLASSES)


if __name__ == "__main__":
    # Small, deterministic shapes consistent with the module's forward.
    B, C, H, W = 2, 4, 16, 16

    key = jax.random.PRNGKey(0)
    kx, kwf, kbf, kwc, kbc = jax.random.split(key, 5)

    x = jax.random.normal(kx, (B, C, H, W), dtype=jnp.float32)

    # Synthetic backbone parameters (deterministic init).
    w_feat = jax.random.normal(kwf, (C, FEAT), dtype=jnp.float32) * 0.1
    b_feat = jax.random.normal(kbf, (1, FEAT), dtype=jnp.float32) * 0.1

    # fc = nn.Linear(512, 10); weight used transposed: (512, 10).
    w_fc = jax.random.normal(kwc, (FEAT, NUM_CLASSES), dtype=jnp.float32) * 0.05
    b_fc = jax.random.normal(kbc, (1, NUM_CLASSES), dtype=jnp.float32) * 0.05

    # One-time weight prep (hoisted out of the forward path).
    params_fused = prepare_transfer_params(w_feat, b_feat, w_fc, b_fc, H * W,
                                           fold_pool=True)
    params_v5e = prepare_transfer_params(w_feat, b_feat, w_fc, b_fc, H * W,
                                         fold_pool=False)

    ref = reference_forward(x, w_feat, b_feat, w_fc, b_fc)

    # --- small-batch latency path: single full-dim block, no padding --------
    out = jax.block_until_ready(transfer_net_forward(x, params_fused))
    assert out.shape == (B, NUM_CLASSES), out.shape
    assert jnp.allclose(out, ref, atol=2e-2, rtol=2e-2), (
        "fused mismatch vs reference: max abs err = "
        f"{float(jnp.max(jnp.abs(out - ref)))}")

    # --- v5e-style un-fused pool variant (XLU reduce + K=C matmul) ----------
    out_u = jax.block_until_ready(transfer_net_forward(x, params_v5e))
    assert out_u.shape == (B, NUM_CLASSES), out_u.shape
    assert jnp.allclose(out_u, ref, atol=2e-2, rtol=2e-2), (
        "unfused mismatch vs reference: max abs err = "
        f"{float(jnp.max(jnp.abs(out_u - ref)))}")

    # --- larger batch: splits into 2 "parallel" grid steps (v7x 2 TCs) ------
    B2 = 256
    x2 = jax.random.normal(jax.random.PRNGKey(1), (B2, C, H, W), jnp.float32)
    out2 = jax.block_until_ready(transfer_net_forward(x2, params_fused))
    ref2 = reference_forward(x2, w_feat, b_feat, w_fc, b_fc)
    assert out2.shape == (B2, NUM_CLASSES), out2.shape
    assert jnp.allclose(out2, ref2, atol=2e-2, rtol=2e-2), (
        "multi-tile mismatch vs reference: max abs err = "
        f"{float(jnp.max(jnp.abs(out2 - ref2)))}")

    # --- non-dividing batch (masked partial trailing block) + bf16 logits ---
    B3 = 300
    x3 = jax.random.normal(jax.random.PRNGKey(2), (B3, C, H, W), jnp.float32)
    out3 = jax.block_until_ready(
        transfer_net_forward(x3, params_fused, out_dtype=jnp.bfloat16))
    ref3 = reference_forward(x3, w_feat, b_feat, w_fc, b_fc)
    assert out3.shape == (B3, NUM_CLASSES), out3.shape
    assert jnp.allclose(out3.astype(jnp.float32), ref3, atol=3e-2, rtol=3e-2), (
        "partial-block / bf16-out mismatch vs reference: max abs err = "
        f"{float(jnp.max(jnp.abs(out3.astype(jnp.float32) - ref3)))}")

    print("KERNEL_OK")
</pallas_src>

<mosaic_0001>
module attributes {stable_mosaic.version = 11 : i64} {
  func.func @transfer_kernel_fused(%arg0: i32, %arg1: memref<2x1024xf32, #tpu.memory_space<vmem>>, %arg2: memref<1024x512xbf16, #tpu.memory_space<vmem>>, %arg3: memref<1x512xf32, #tpu.memory_space<vmem>>, %arg4: memref<512x128xbf16, #tpu.memory_space<vmem>>, %arg5: memref<1x128xf32, #tpu.memory_space<vmem>>, %arg6: memref<2x128xf32, #tpu.memory_space<vmem>>) attributes {dimension_semantics = [#tpu.dimension_semantics<parallel>], iteration_bounds = array<i64: 1>, scalar_prefetch = 0 : i64, scratch_operands = 0 : i64, tpu.core_type = #tpu.core_type<tc>, window_params = [{transform_indices = @transform_0, window_bounds = array<i64: 2, 1024>}, {pipeline_mode = #tpu.pipeline_mode<synchronous>, transform_indices = @transform_1, window_bounds = array<i64: 1024, 512>}, {pipeline_mode = #tpu.pipeline_mode<synchronous>, transform_indices = @transform_2, window_bounds = array<i64: 1, 512>}, {pipeline_mode = #tpu.pipeline_mode<synchronous>, transform_indices = @transform_3, window_bounds = array<i64: 512, 128>}, {pipeline_mode = #tpu.pipeline_mode<synchronous>, transform_indices = @transform_4, window_bounds = array<i64: 1, 128>}, {transform_indices = @transform_5, window_bounds = array<i64: 2, 128>}]} {
    %c0 = arith.constant 0 : index
    %c0_0 = arith.constant 0 : index
    %0 = vector.load %arg1[%c0, %c0_0] : memref<2x1024xf32, #tpu.memory_space<vmem>>, vector<2x1024xf32>
    %1 = arith.truncf %0 : vector<2x1024xf32> to vector<2x1024xbf16>
    %c0_1 = arith.constant 0 : index
    %c0_2 = arith.constant 0 : index
    %2 = vector.load %arg2[%c0_1, %c0_2] : memref<1024x512xbf16, #tpu.memory_space<vmem>>, vector<1024x512xbf16>
    %cst = arith.constant dense<0.000000e+00> : vector<2x512xf32>
    %3 = tpu.matmul %1, %2, %cst {dimension_numbers = #tpu.dot_dimension_numbers<[1], [0], [0], [1], [0, 0, 1, 1], [], []>} : vector<2x1024xbf16>, vector<1024x512xbf16>, vector<2x512xf32> -> vector<2x512xf32>
    %c0_3 = arith.constant 0 : index
    %c0_4 = arith.constant 0 : index
    %4 = vector.load %arg3[%c0_3, %c0_4] : memref<1x512xf32, #tpu.memory_space<vmem>>, vector<1x512xf32>
    %5 = vector.broadcast %4 : vector<1x512xf32> to vector<2x512xf32>
    %6 = arith.addf %3, %5 : vector<2x512xf32>
    %cst_5 = arith.constant 0.000000e+00 : f32
    %7 = vector.broadcast %cst_5 : f32 to vector<2x512xf32>
    %8 = arith.maximumf %6, %7 : vector<2x512xf32>
    %9 = arith.truncf %8 : vector<2x512xf32> to vector<2x512xbf16>
    %c0_6 = arith.constant 0 : index
    %c0_7 = arith.constant 0 : index
    %10 = vector.load %arg4[%c0_6, %c0_7] : memref<512x128xbf16, #tpu.memory_space<vmem>>, vector<512x128xbf16>
    %cst_8 = arith.constant dense<0.000000e+00> : vector<2x128xf32>
    %11 = tpu.matmul %9, %10, %cst_8 {dimension_numbers = #tpu.dot_dimension_numbers<[1], [0], [0], [1], [0, 0, 1, 1], [], []>} : vector<2x512xbf16>, vector<512x128xbf16>, vector<2x128xf32> -> vector<2x128xf32>
    %c0_9 = arith.constant 0 : index
    %c0_10 = arith.constant 0 : index
    %12 = vector.load %arg5[%c0_9, %c0_10] : memref<1x128xf32, #tpu.memory_space<vmem>>, vector<1x128xf32>
    %13 = vector.broadcast %12 : vector<1x128xf32> to vector<2x128xf32>
    %14 = arith.addf %11, %13 : vector<2x128xf32>
    %c0_11 = arith.constant 0 : index
    %c0_12 = arith.constant 0 : index
    %15 = vector.load %arg6[%c0_11, %c0_12] : memref<2x128xf32, #tpu.memory_space<vmem>>, vector<2x128xf32>
    tpu.vector_store %arg6[%c0_11, %c0_12], %14 {strides = array<i32>} : memref<2x128xf32, #tpu.memory_space<vmem>>, vector<2x128xf32>,
    return
  }
  func.func @transform_0(%arg0: i32) -> (i32, i32) {
    %c0_i32 = arith.constant 0 : i32
    %c0_i32_0 = arith.constant 0 : i32
    return %arg0, %c0_i32 : i32, i32
  }
  func.func @transform_1(%arg0: i32) -> (i32, i32) {
    %c0_i32 = arith.constant 0 : i32
    %c0_i32_0 = arith.constant 0 : i32
    %c0_i32_1 = arith.constant 0 : i32
    return %c0_i32, %c0_i32_0 : i32, i32
  }
  func.func @transform_2(%arg0: i32) -> (i32, i32) {
    %c0_i32 = arith.constant 0 : i32
    %c0_i32_0 = arith.constant 0 : i32
    %c0_i32_1 = arith.constant 0 : i32
    return %c0_i32, %c0_i32_0 : i32, i32
  }
  func.func @transform_3(%arg0: i32) -> (i32, i32) {
    %c0_i32 = arith.constant 0 : i32
    %c0_i32_0 = arith.constant 0 : i32
    %c0_i32_1 = arith.constant 0 : i32
    return %c0_i32, %c0_i32_0 : i32, i32
  }
  func.func @transform_4(%arg0: i32) -> (i32, i32) {
    %c0_i32 = arith.constant 0 : i32
    %c0_i32_0 = arith.constant 0 : i32
    %c0_i32_1 = arith.constant 0 : i32
    return %c0_i32, %c0_i32_0 : i32, i32
  }
  func.func @transform_5(%arg0: i32) -> (i32, i32) {
    %c0_i32 = arith.constant 0 : i32
    %c0_i32_0 = arith.constant 0 : i32
    return %arg0, %c0_i32 : i32, i32
  }
}

</mosaic_0001>

<bundles_post_ra>
// kernel: tpu_custom_call.1
= control target key start
LH: loop header
LB: loop body
LE: loop exit
PB: predicated region body
PF: predicated region fallthrough
CT: control target
= control target key end

     0   :  { %10 = vsyncpa [#allocation3], 0  ;;  %s3375_s0 = inlined_call_operand.hbm [shape: f32[2,1024], index: 0, kind: input, shape index: {}]   ;;  %s3376_s1 = inlined_call_operand.hbm [shape: bf16[1024,512], index: 1, kind: input, shape index: {}]   ;;  %s3377_s2 = inlined_call_operand.hbm [shape: f32[1,512], index: 2, kind: input, shape index: {}]   ;;  %s3378_s3 = inlined_call_operand.hbm [shape: bf16[512,128], index: 3, kind: input, shape index: {}]   ;;  %s3379_s4 = inlined_call_operand.vmem [shape: f32[1,128], index: 4, kind: input, shape index: {}]   ;;  %s3380_s5 = inlined_call_operand.hbm [shape: f32[2,128], index: 5, kind: output, shape index: {}]  }
   0x1   :  { %11 = vsyncpa [#allocation6], 0 }
   0x2   :  { %12 = vsyncpa [#allocation9], 0 }
   0x3   :  { %13 = vsyncpa [#allocation4], 0  ;;  %s3251_s18 = smov [#allocation5]  }
   0x4   :  { %s29_s19 = sshll.u32 %s3251_s18, 4  ;;  %s30_s19 = int_to_ptr.vmem [resolvable:$true] %s29_s19 }
   0x5   :  { %s3151_s20 = scalar_lea.vmem %s30_s19, 32768  ;;  %p3156_p1 = scmp.lt.s32.totalorder %s30_s19, %s30_s19 }
   0x6   :  { %p3152_p0 = scmp.ne.s32.totalorder %s30_s19, %s3151_s20  ;;  %p3157_p2 = scmp.lt.s32.totalorder %s3151_s20, %s3151_s20 }
   0x8   :  { %p3158_p3 = por %p3157_p2, %p3156_p1 }
   0xa   :  { %p3159_p4 = pnand %p3158_p3, %p3152_p0 }
   0xc   :  { %3162 = shalt.err (!%p3159_p4)
}
   0xd   :  { %s3252_s21 = smov 256   ;;  %s3253_s22 = smov 16  }
   0xe   :  { %35 = dma.hbm_to_vmem [thread:$0]  %s3376_s1, 32768, %s30_s19, [#allocation6], %s3252_s21, %s3252_s21, %s3253_s22  }
   0xf   :  { %s3254_s25 = smov [#allocation2]   ;;  %s3255_s27 = smov [#allocation7]  }
  0x10   :  { %s20_s26 = sshll.u32 %s3254_s25, 4  ;;  %s42_s28 = sshll.u32 %s3255_s27, 4  ;;  %s21_s26 = int_to_ptr.vmem [resolvable:$true] %s20_s26  ;;  %s43_s28 = int_to_ptr.vmem [resolvable:$true] %s42_s28 }
  0x11   :  { %s3171_s29 = scalar_lea.vmem %s21_s26, 256  ;;  %p3176_p6 = scmp.lt.s32.totalorder %s21_s26, %s21_s26 }
  0x12   :  { %p3172_p5 = scmp.ne.s32.totalorder %s21_s26, %s3171_s29  ;;  %p3177_p7 = scmp.lt.s32.totalorder %s3171_s29, %s3171_s29 }
  0x14   :  { %p3178_p8 = por %p3177_p7, %p3176_p6 }
  0x16   :  { %p3179_p9 = pnand %p3178_p8, %p3172_p5 }
  0x18   :  { %3182 = shalt.err (!%p3179_p9)
}
  0x19   :  { %23 = dma.hbm_to_vmem [thread:$0]  %s3375_s0, 256, %s21_s26, [#allocation3]  }
  0x1a   :  { %s3191_s7 = scalar_lea.vmem %s43_s28, 64  ;;  %p3196_p11 = scmp.lt.s32.totalorder %s43_s28, %s43_s28 }
  0x1b   :  { %p3192_p10 = scmp.ne.s32.totalorder %s43_s28, %s3191_s7  ;;  %p3197_p12 = scmp.lt.s32.totalorder %s3191_s7, %s3191_s7 }
  0x1d   :  { %p3198_p13 = por %p3197_p12, %p3196_p11 }
  0x1f   :  { %p3199_p0 = pnand %p3198_p13, %p3192_p10 }
  0x21   :  { %3202 = shalt.err (!%p3199_p0)
}
  0x22   :  { %45 = dma.hbm_to_vmem [thread:$0]  %s3377_s2, 64, %s43_s28, [#allocation6]  }
  0x23   :  { %s3256_s9 = smov [#allocation8]  }
  0x24   :  { %s51_s10 = sshll.u32 %s3256_s9, 4  ;;  %s52_s10 = int_to_ptr.vmem [resolvable:$true] %s51_s10 }
  0x25   :  { %s3211_s11 = scalar_lea.vmem %s52_s10, 4096  ;;  %p3216_p2 = scmp.lt.s32.totalorder %s52_s10, %s52_s10 }
  0x26   :  { %p3212_p1 = scmp.ne.s32.totalorder %s52_s10, %s3211_s11  ;;  %p3217_p3 = scmp.lt.s32.totalorder %s3211_s11, %s3211_s11 }
  0x28   :  { %p3218_p4 = por %p3217_p3, %p3216_p2 }
  0x2a   :  { %p3219_p5 = pnand %p3218_p4, %p3212_p1 }
  0x2c   :  { %3222 = shalt.err (!%p3219_p5)
}
  0x2d   :  { %s3257_s0 = smov 64   ;;  %s3258_s12 = smov 4  }
  0x2e   :  { %57 = dma.hbm_to_vmem [thread:$0]  %s3378_s3, 4096, %s52_s10, [#allocation9], %s3257_s0, %s3257_s0, %s3258_s12  }
  0x2f   :  { %3243 = dma.done.wait [#allocation3], 256  }
  0x30   :  { %3244 = vsyncadd [#allocation3], 4294967040 }
  0x31   :  { %3245 = dma.done.wait [#allocation6], 32832  }
  0x32   :  { %3246 = vsyncadd [#allocation6], 4294934464 }
  0x33   :  { %3247 = dma.done.wait [#allocation9], 4096  }
  0x34   :  { %3248 = vsyncadd [#allocation9], 4294963200  ;;  %v2725_v0 = vld [vmem:[#allocation5 + $0xe4] ss:$16 sps:$4 sm:$0xff]   ;;  %v2729_v2 = vld [vmem:[#allocation5 + $0xe0] ss:$16 sps:$4 sm:$0xff]   ;;  %v81_v38 = vlaneseq }
  0x35   :  { %v2727_v1 = vld [vmem:[#allocation5 + $0x2e4] ss:$16 sps:$4 sm:$0xff]   ;;  %1685 = vmatprep.subr.bf16.mxu0 %v2725_v0  ;;  %v2730_v3 = vld [vmem:[#allocation5 + $0x2e0] ss:$16 sps:$4 sm:$0xff]   ;;  %v3259_v36 = vmov 1983009808  }
  0x36   :  { %1726 = vmatprep.subr.bf16.mxu1 %v2727_v1  ;;  %v2731_v4 = vld [vmem:[#allocation5 + $0xc4] ss:$16 sps:$4 sm:$0xff]   ;;  %1686 = vmatpush1.bf16.msra.mxu0 %v2729_v2  ;;  %v2735_v6 = vld [vmem:[#allocation5 + $0xc0] ss:$16 sps:$4 sm:$0xff]   ;;  %v79_v37 = vunpack.c.l.s4 %v3259_v36  ;;  %v3303_v43 = vshrl.u32 %v81_v38, 7  ;;  %s3260_s15 = smov [#allocation10]  }
  0x37   :  { %1727 = vmatpush1.bf16.msra.mxu1 %v2730_v3  ;;  %v2733_v5 = vld [vmem:[#allocation5 + $0x2c4] ss:$16 sps:$4 sm:$0xff]   ;;  %1687 = vmatprep.subr.bf16.mxu0 %v2731_v4  ;;  %v2736_v7 = vld [vmem:[#allocation5 + $0x2c0] ss:$16 sps:$4 sm:$0xff]   ;;  %s2371_s16 = sshll.u32 %s3260_s15, 4  ;;  %s2372_s16 = int_to_ptr.vmem [resolvable:$true] %s2371_s16 }
  0x38   :  { %1728 = vmatprep.subr.bf16.mxu1 %v2733_v5  ;;  %v2737_v8 = vld [vmem:[#allocation5 + $0xa4] ss:$16 sps:$4 sm:$0xff]   ;;  %v2741_v10 = vld [vmem:[#allocation5 + $0xa0] ss:$16 sps:$4 sm:$0xff]   ;;  %v80_v42 = vunpack.c.0.s8 %v79_v37  ;;  %s3223_s17 = scalar_lea.vmem %s2372_s16, 32  ;;  %p3228_p7 = scmp.lt.s32.totalorder %s2372_s16, %s2372_s16 }
  0x39   :  { %v2739_v9 = vld [vmem:[#allocation5 + $0x2a4] ss:$16 sps:$4 sm:$0xff]   ;;  %v2742_v11 = vld [vmem:[#allocation5 + $0x2a0] ss:$16 sps:$4 sm:$0xff]   ;;  %p3224_p6 = scmp.ne.s32.totalorder %s2372_s16, %s3223_s17  ;;  %p3229_p8 = scmp.lt.s32.totalorder %s3223_s17, %s3223_s17 }
  0x3a   :  { %1688 = vmatpush1.bf16.msra.mxu0 %v2735_v6  ;;  %v2743_v12 = vld [vmem:[#allocation5 + $0x84] ss:$16 sps:$4 sm:$0xff]   ;;  %v2747_v14 = vld [vmem:[#allocation5 + $0x80] ss:$16 sps:$4 sm:$0xff]   ;;  %v3306_v49 = vsub.s32 %v80_v42, %v3303_v43  ;;  %v74_v42 = vld [vmem:[#allocation2 + $0x8] sm:$0xff] }
  0x3b   :  { %1729 = vmatpush1.bf16.msra.mxu1 %v2736_v7  ;;  %1689 = vmatprep.subr.bf16.mxu0 %v2737_v8  ;;  %v2745_v13 = vld [vmem:[#allocation5 + $0x284] ss:$16 sps:$4 sm:$0xff]   ;;  %v2748_v15 = vld [vmem:[#allocation5 + $0x280] ss:$16 sps:$4 sm:$0xff]   ;;  %p3230_p9 = por %p3229_p8, %p3228_p7 }
  0x3c   :  { %1730 = vmatprep.subr.bf16.mxu1 %v2739_v9  ;;  %v2749_v16 = vld [vmem:[#allocation5 + $0x64] ss:$16 sps:$4 sm:$0xff]   ;;  %v2753_v18 = vld [vmem:[#allocation5 + $0x60] ss:$16 sps:$4 sm:$0xff]  }
  0x3d   :  { %v2751_v17 = vld [vmem:[#allocation5 + $0x264] ss:$16 sps:$4 sm:$0xff]   ;;  %v2754_v19 = vld [vmem:[#allocation5 + $0x260] ss:$16 sps:$4 sm:$0xff]   ;;  %p3231_p10 = pnand %p3230_p9, %p3224_p6 }
  0x3e   :  { %1690 = vmatpush1.bf16.msra.mxu0 %v2741_v10  ;;  %v2755_v20 = vld [vmem:[#allocation5 + $0x44] ss:$16 sps:$4 sm:$0xff]   ;;  %v2759_v22 = vld [vmem:[#allocation5 + $0x40] ss:$16 sps:$4 sm:$0xff]  }
  0x3f   :  { %1731 = vmatpush1.bf16.msra.mxu1 %v2742_v11  ;;  %1691 = vmatprep.subr.bf16.mxu0 %v2743_v12  ;;  %v2757_v21 = vld [vmem:[#allocation5 + $0x244] ss:$16 sps:$4 sm:$0xff]   ;;  %v2760_v23 = vld [vmem:[#allocation5 + $0x240] ss:$16 sps:$4 sm:$0xff]  }
  0x40   :  { %1732 = vmatprep.subr.bf16.mxu1 %v2745_v13  ;;  %v2761_v24 = vld [vmem:[#allocation5 + $0x24] ss:$16 sps:$4 sm:$0xff]   ;;  %v2765_v26 = vld [vmem:[#allocation5 + $0x20] ss:$16 sps:$4 sm:$0xff]  }
  0x41   :  { %v2763_v25 = vld [vmem:[#allocation5 + $0x224] ss:$16 sps:$4 sm:$0xff]   ;;  %v2766_v27 = vld [vmem:[#allocation5 + $0x220] ss:$16 sps:$4 sm:$0xff]  }
  0x42   :  { %1692 = vmatpush1.bf16.msra.mxu0 %v2747_v14  ;;  %v2767_v28 = vld [vmem:[#allocation5 + $0x4] ss:$16 sps:$4 sm:$0xff]   ;;  %v2771_v30 = vld [vmem:[#allocation5] ss:$16 sps:$4 sm:$0xff]  }
  0x43   :  { %1733 = vmatpush1.bf16.msra.mxu1 %v2748_v15  ;;  %1693 = vmatprep.subr.bf16.mxu0 %v2749_v16  ;;  %v2769_v29 = vld [vmem:[#allocation5 + $0x204] ss:$16 sps:$4 sm:$0xff]   ;;  %v2772_v31 = vld [vmem:[#allocation5 + $0x200] ss:$16 sps:$4 sm:$0xff]  }
  0x44   :  { %1734 = vmatprep.subr.bf16.mxu1 %v2751_v17  ;;  %v2773_v32 = vld [vmem:[#allocation5 + $0x1e4] ss:$16 sps:$4 sm:$0xff]   ;;  %v2777_v34 = vld [vmem:[#allocation5 + $0x1e0] ss:$16 sps:$4 sm:$0xff]  }
  0x45   :  { %v2775_v33 = vld [vmem:[#allocation5 + $0x3e4] ss:$16 sps:$4 sm:$0xff]   ;;  %v2778_v35 = vld [vmem:[#allocation5 + $0x3e0] ss:$16 sps:$4 sm:$0xff]  }
  0x46   :  { %1694 = vmatpush1.bf16.msra.mxu0 %v2753_v18  ;;  %v2779_v39 = vld [vmem:[#allocation5 + $0x1c4] ss:$16 sps:$4 sm:$0xff]   ;;  %v2783_v41 = vld [vmem:[#allocation5 + $0x1c0] ss:$16 sps:$4 sm:$0xff]  }
  0x47   :  { %1735 = vmatpush1.bf16.msra.mxu1 %v2754_v19  ;;  %1695 = vmatprep.subr.bf16.mxu0 %v2755_v20  ;;  %v2781_v40 = vld [vmem:[#allocation5 + $0x3c4] ss:$16 sps:$4 sm:$0xff]   ;;  %v2784_v44 = vld [vmem:[#allocation5 + $0x3c0] ss:$16 sps:$4 sm:$0xff]  }
  0x48   :  { %1736 = vmatprep.subr.bf16.mxu1 %v2757_v21  ;;  %v2785_v45 = vld [vmem:[#allocation5 + $0x1a4] ss:$16 sps:$4 sm:$0xff]   ;;  %v2789_v47 = vld [vmem:[#allocation5 + $0x1a0] ss:$16 sps:$4 sm:$0xff]  }
  0x49   :  { %v2787_v46 = vld [vmem:[#allocation5 + $0x3a4] ss:$16 sps:$4 sm:$0xff]   ;;  %v2790_v48 = vld [vmem:[#allocation5 + $0x3a0] ss:$16 sps:$4 sm:$0xff]  }
  0x4a   :  { %1696 = vmatpush1.bf16.msra.mxu0 %v2759_v22  ;;  %v2791_v50 = vld [vmem:[#allocation5 + $0x184] ss:$16 sps:$4 sm:$0xff]   ;;  %v2795_v53 = vld [vmem:[#allocation5 + $0x180] ss:$16 sps:$4 sm:$0xff]  }
  0x4b   :  { %1737 = vmatpush1.bf16.msra.mxu1 %v2760_v23  ;;  %1697 = vmatprep.subr.bf16.mxu0 %v2761_v24  ;;  %v2793_v51 = vld [vmem:[#allocation5 + $0x384] ss:$16 sps:$4 sm:$0xff]   ;;  %v2796_v56 = vld [vmem:[#allocation5 + $0x380] ss:$16 sps:$4 sm:$0xff]  }
  0x4c   :  { %1738 = vmatprep.subr.bf16.mxu1 %v2763_v25  ;;  %v73_v52 = vld [vmem:[#allocation2] sm:$0xff] }
  0x4d   :  { %v84_v54 = vrot.slane %v73_v52, %v3306_v49  ;;  %v77_v55 = vcombine.high %v73_v52, %v73_v52  ;;  %v2797_v57 = vld [vmem:[#allocation5 + $0x164] ss:$16 sps:$4 sm:$0xff]   ;;  %v2801_v61 = vld [vmem:[#allocation5 + $0x160] ss:$16 sps:$4 sm:$0xff]  }
  0x4e   :  { %1698 = vmatpush1.bf16.msra.mxu0 %v2765_v26  ;;  %v2799_v58 = vld [vmem:[#allocation5 + $0x364] ss:$16 sps:$4 sm:$0xff]   ;;  %v2802_v0 = vld [vmem:[#allocation5 + $0x360] ss:$16 sps:$4 sm:$0xff]  }
  0x4f   :  { %1739 = vmatpush1.bf16.msra.mxu1 %v2766_v27  ;;  %1699 = vmatprep.subr.bf16.mxu0 %v2767_v28  ;;  %v92_v59 = vcombine.high %v84_v54, %v84_v54  ;;  %v91_v60 = vrot.slane %v77_v55, %v3306_v49  ;;  %v2803_v1 = vld [vmem:[#allocation5 + $0x144] ss:$16 sps:$4 sm:$0xff]   ;;  %v2807_v4 = vld [vmem:[#allocation5 + $0x140] ss:$16 sps:$4 sm:$0xff]   ;;  %v3316_v16 = vpack.c.bf16 %v84_v54, %v84_v54 }
  0x50   :  { %1740 = vmatprep.subr.bf16.mxu1 %v2769_v29  ;;  %v2805_v2 = vld [vmem:[#allocation5 + $0x344] ss:$16 sps:$4 sm:$0xff]   ;;  %v2808_v5 = vld [vmem:[#allocation5 + $0x340] ss:$16 sps:$4 sm:$0xff]  }
  0x51   :  { %v3310_v62 = vpack.c.bf16 %v92_v59, %v92_v59  ;;  %v93_v63 = vcombine.high %v91_v60, %v91_v60  ;;  %v2809_v6 = vld [vmem:[#allocation5 + $0x124] ss:$16 sps:$4 sm:$0xff]   ;;  %v2813_v8 = vld [vmem:[#allocation5 + $0x120] ss:$16 sps:$4 sm:$0xff]   ;;  %v3318_v17 = vpack.c.bf16 %v91_v60, %v91_v60 }
  0x52   :  { %1700 = vmatpush1.bf16.msra.mxu0 %v2771_v30  ;;  %v2811_v7 = vld [vmem:[#allocation5 + $0x324] ss:$16 sps:$4 sm:$0xff]   ;;  %v2814_v9 = vld [vmem:[#allocation5 + $0x320] ss:$16 sps:$4 sm:$0xff]  }
  0x53   :  { %1741 = vmatpush1.bf16.msra.mxu1 %v2772_v31  ;;  %1701 = vmatprep.subr.bf16.mxu0 %v2773_v32  ;;  %v3312_v3 = vpack.c.bf16 %v93_v63, %v93_v63  ;;  %v2815_v10 = vld [vmem:[#allocation5 + $0x104] ss:$16 sps:$4 sm:$0xff]   ;;  %v2819_v12 = vld [vmem:[#allocation5 + $0x100] ss:$16 sps:$4 sm:$0xff]  }
  0x54   :  { %1742 = vmatprep.subr.bf16.mxu1 %v2775_v33  ;;  %1717 = vmatprep.mubr.bf16.mxu0 %v3310_v62  ;;  %v2817_v11 = vld [vmem:[#allocation5 + $0x304] ss:$16 sps:$4 sm:$0xff]   ;;  %v2820_v13 = vld [vmem:[#allocation5 + $0x300] ss:$16 sps:$4 sm:$0xff]  }
  0x55   :  { %1758 = vmatprep.mubr.bf16.mxu1 %v3312_v3  ;;  %v2824_v14 = vld [vmem:[#allocation5 + $0x4e4] ss:$16 sps:$4 sm:$0xff]   ;;  %v2822_v18 = vld [vmem:[#allocation5 + $0x4e0] ss:$16 sps:$4 sm:$0xff]  }
  0x56   :  { %1702 = vmatpush2.bf16.msra.mxu0 %v2777_v34  ;;  %v2827_v15 = vld [vmem:[#allocation5 + $0x6e4] ss:$16 sps:$4 sm:$0xff]   ;;  %v2825_v19 = vld [vmem:[#allocation5 + $0x6e0] ss:$16 sps:$4 sm:$0xff]  }
  0x57   :  { %1743 = vmatpush2.bf16.msra.mxu1 %v2778_v35  ;;  %1703 = vmatprep.subr.bf16.mxu0 %v2779_v39  ;;  %v2830_v20 = vld [vmem:[#allocation5 + $0x4c4] ss:$16 sps:$4 sm:$0xff]   ;;  %v2828_v22 = vld [vmem:[#allocation5 + $0x4c0] ss:$16 sps:$4 sm:$0xff]  }
  0x58   :  { %1744 = vmatprep.subr.bf16.mxu1 %v2781_v40  ;;  %v2833_v21 = vld [vmem:[#allocation5 + $0x6c4] ss:$16 sps:$4 sm:$0xff]   ;;  %v2831_v23 = vld [vmem:[#allocation5 + $0x6c0] ss:$16 sps:$4 sm:$0xff]  }
  0x59   :  { %v2836_v24 = vld [vmem:[#allocation5 + $0x4a4] ss:$16 sps:$4 sm:$0xff]   ;;  %v2834_v26 = vld [vmem:[#allocation5 + $0x4a0] ss:$16 sps:$4 sm:$0xff]  }
  0x5a   :  { %1704 = vmatpush2.bf16.msra.mxu0 %v2783_v41  ;;  %v2839_v25 = vld [vmem:[#allocation5 + $0x6a4] ss:$16 sps:$4 sm:$0xff]   ;;  %v2837_v27 = vld [vmem:[#allocation5 + $0x6a0] ss:$16 sps:$4 sm:$0xff]  }
  0x5b   :  { %1745 = vmatpush2.bf16.msra.mxu1 %v2784_v44  ;;  %1705 = vmatprep.subr.bf16.mxu0 %v2785_v45  ;;  %v2842_v28 = vld [vmem:[#allocation5 + $0x484] ss:$16 sps:$4 sm:$0xff]   ;;  %v2840_v30 = vld [vmem:[#allocation5 + $0x480] ss:$16 sps:$4 sm:$0xff]   ;;  %v3323_v44 = vrot.slane %v74_v42, %v3306_v49  ;;  %v94_v45 = vcombine.high %v74_v42, %v74_v42  ;;  %v2934_v42 = vld [vmem:[#allocation5 + $0x2a8] ss:$16 sps:$4 sm:$0xff]  }
  0x5c   :  { %1746 = vmatprep.subr.bf16.mxu1 %v2787_v46  ;;  %v2845_v29 = vld [vmem:[#allocation5 + $0x684] ss:$16 sps:$4 sm:$0xff]   ;;  %v2843_v31 = vld [vmem:[#allocation5 + $0x680] ss:$16 sps:$4 sm:$0xff]  }
  0x5d   :  { %v2848_v32 = vld [vmem:[#allocation5 + $0x464] ss:$16 sps:$4 sm:$0xff]   ;;  %v2846_v34 = vld [vmem:[#allocation5 + $0x460] ss:$16 sps:$4 sm:$0xff]  }
  0x5e   :  { %1706 = vmatpush2.bf16.msra.mxu0 %v2789_v47  ;;  %v2851_v33 = vld [vmem:[#allocation5 + $0x664] ss:$16 sps:$4 sm:$0xff]   ;;  %v2849_v35 = vld [vmem:[#allocation5 + $0x660] ss:$16 sps:$4 sm:$0xff]  }
  0x5f   :  { %1747 = vmatpush2.bf16.msra.mxu1 %v2790_v48  ;;  %1707 = vmatprep.subr.bf16.mxu0 %v2791_v50  ;;  %v2854_v36 = vld [vmem:[#allocation5 + $0x444] ss:$16 sps:$4 sm:$0xff]   ;;  %v2852_v38 = vld [vmem:[#allocation5 + $0x440] ss:$16 sps:$4 sm:$0xff]   ;;  %v109_v48 = vcombine.high %v3323_v44, %v3323_v44  ;;  %v3328_v50 = vrot.slane %v94_v45, %v3306_v49  ;;  %v2942_v45 = vld [vmem:[#allocation5 + $0x28c] ss:$16 sps:$4 sm:$0xff]  }
  0x60   :  { %1748 = vmatprep.subr.bf16.mxu1 %v2793_v51  ;;  %v2857_v37 = vld [vmem:[#allocation5 + $0x644] ss:$16 sps:$4 sm:$0xff]   ;;  %v2855_v39 = vld [vmem:[#allocation5 + $0x640] ss:$16 sps:$4 sm:$0xff]  }
  0x61   :  { %v2860_v40 = vld [vmem:[#allocation5 + $0x424] ss:$16 sps:$4 sm:$0xff]   ;;  %v2858_v46 = vld [vmem:[#allocation5 + $0x420] ss:$16 sps:$4 sm:$0xff]   ;;  %v110_v54 = vcombine.high %v3328_v50, %v3328_v50 }
  0x62   :  { %1708 = vmatpush2.bf16.msra.mxu0 %v2795_v53  ;;  %v2863_v41 = vld [vmem:[#allocation5 + $0x624] ss:$16 sps:$4 sm:$0xff]   ;;  %v2861_v47 = vld [vmem:[#allocation5 + $0x620] ss:$16 sps:$4 sm:$0xff]   ;;  %v3330_v53 = vpack.c.bf16 %v109_v48, %v109_v48  ;;  %v2945_v48 = vld [vmem:[#allocation5 + $0x6c] ss:$16 sps:$4 sm:$0xff]  }
  0x63   :  { %1749 = vmatpush2.bf16.msra.mxu1 %v2796_v56  ;;  %1709 = vmatprep.subr.bf16.mxu0 %v2797_v57  ;;  %v2866_v51 = vld [vmem:[#allocation5 + $0x404] ss:$16 sps:$4 sm:$0xff]   ;;  %v2864_v55 = vld [vmem:[#allocation5 + $0x400] ss:$16 sps:$4 sm:$0xff]   ;;  %v3334_v57 = vpack.c.bf16 %v110_v54, %v110_v54  ;;  %v2949_v54 = vld [vmem:[#allocation5 + $0x48] ss:$16 sps:$4 sm:$0xff]  }
  0x64   :  { %1750 = vmatprep.subr.bf16.mxu1 %v2799_v58  ;;  %v2869_v52 = vld [vmem:[#allocation5 + $0x604] ss:$16 sps:$4 sm:$0xff]   ;;  %v2867_v56 = vld [vmem:[#allocation5 + $0x600] ss:$16 sps:$4 sm:$0xff]  }
  0x65   :  { %v2872_v58 = vld [vmem:[#allocation5 + $0x5e4] ss:$16 sps:$4 sm:$0xff]   ;;  %v2870_v59 = vld [vmem:[#allocation5 + $0x5e0] ss:$16 sps:$4 sm:$0xff]  }
  0x66   :  { %1710 = vmatpush2.bf16.msra.mxu0 %v2801_v61  ;;  %v2875_v49 = vld [vmem:[#allocation5 + $0x7e4] ss:$16 sps:$4 sm:$0xff]   ;;  %v2873_v60 = vld [vmem:[#allocation5 + $0x7e0] ss:$16 sps:$4 sm:$0xff]  }
  0x67   :  { %1751 = vmatpush2.bf16.msra.mxu1 %v2802_v0  ;;  %1711 = vmatprep.subr.bf16.mxu0 %v2803_v1  ;;  %v2878_v61 = vld [vmem:[#allocation5 + $0x5c4] ss:$16 sps:$4 sm:$0xff]   ;;  %v2876_v0 = vld [vmem:[#allocation5 + $0x5c0] ss:$16 sps:$4 sm:$0xff]  }
  0x68   :  { %1752 = vmatprep.subr.bf16.mxu1 %v2805_v2  ;;  %v2881_v63 = vld [vmem:[#allocation5 + $0x7c4] ss:$16 sps:$4 sm:$0xff]   ;;  %v2879_v1 = vld [vmem:[#allocation5 + $0x7c0] ss:$16 sps:$4 sm:$0xff]  }
  0x69   :  { %v2884_v2 = vld [vmem:[#allocation5 + $0x5a4] ss:$16 sps:$4 sm:$0xff]  }
  0x6a   :  { %1712 = vmatpush2.bf16.msra.mxu0 %v2807_v4  ;;  %v2887_v4 = vld [vmem:[#allocation5 + $0x7a4] ss:$16 sps:$4 sm:$0xff]  }
  0x6b   :  { %1753 = vmatpush2.bf16.msra.mxu1 %v2808_v5  ;;  %1713 = vmatprep.subr.bf16.mxu0 %v2809_v6  ;;  %v2882_v5 = vld [vmem:[#allocation5 + $0x5a0] ss:$16 sps:$4 sm:$0xff]  }
  0x6c   :  { %1754 = vmatprep.subr.bf16.mxu1 %v2811_v7  ;;  %v2885_v6 = vld [vmem:[#allocation5 + $0x7a0] ss:$16 sps:$4 sm:$0xff]   ;;  %v2890_v7 = vld [vmem:[#allocation5 + $0x584] ss:$16 sps:$4 sm:$0xff]  }
  0x6e   :  { %1714 = vmatpush2.bf16.msra.mxu0 %v2813_v8  ;;  %v2893_v8 = vld [vmem:[#allocation5 + $0x784] ss:$16 sps:$4 sm:$0xff]  }
  0x6f   :  { %1755 = vmatpush2.bf16.msra.mxu1 %v2814_v9  ;;  %1715 = vmatprep.subr.bf16.mxu0 %v2815_v10  ;;  %v2888_v9 = vld [vmem:[#allocation5 + $0x580] ss:$16 sps:$4 sm:$0xff]  }
  0x70   :  { %1756 = vmatprep.subr.bf16.mxu1 %v2817_v11  ;;  %v2891_v10 = vld [vmem:[#allocation5 + $0x780] ss:$16 sps:$4 sm:$0xff]   ;;  %v2896_v11 = vld [vmem:[#allocation5 + $0x564] ss:$16 sps:$4 sm:$0xff]  }
  0x72   :  { %1716 = vmatpush2.bf16.msra.mxu0 %v2819_v12  ;;  %v2899_v12 = vld [vmem:[#allocation5 + $0x764] ss:$16 sps:$4 sm:$0xff]  }
  0x73   :  { %1757 = vmatpush2.bf16.msra.mxu1 %v2820_v13  ;;  %1767 = vmatprep.subr.bf16.mxu0 %v2824_v14  ;;  %v2894_v13 = vld [vmem:[#allocation5 + $0x560] ss:$16 sps:$4 sm:$0xff]  }
  0x74   :  { %1808 = vmatprep.subr.bf16.mxu1 %v2827_v15  ;;  %v2897_v14 = vld [vmem:[#allocation5 + $0x760] ss:$16 sps:$4 sm:$0xff]   ;;  %v2902_v15 = vld [vmem:[#allocation5 + $0x544] ss:$16 sps:$4 sm:$0xff]  }
  0x75   :  { %1718 = vmatmul.mubr.bf16.vlgmr.msra.gmra.mxu0 %v3316_v16 }
  0x76   :  { %1759 = vmatmul.mubr.bf16.vlgmr.msra.gmra.mxu1 %v3318_v17  ;;  %1768 = vmatpush1.bf16.msra.mxu0 %v2822_v18  ;;  %v2905_v18 = vld [vmem:[#allocation5 + $0x744] ss:$16 sps:$4 sm:$0xff]  }
  0x77   :  { %1809 = vmatpush1.bf16.msra.mxu1 %v2825_v19  ;;  %1769 = vmatprep.subr.bf16.mxu0 %v2830_v20  ;;  %v2900_v19 = vld [vmem:[#allocation5 + $0x540] ss:$16 sps:$4 sm:$0xff]  }
  0x78   :  { %1810 = vmatprep.subr.bf16.mxu1 %v2833_v21  ;;  %1799 = vmatprep.mubr.bf16.mxu0 %v3330_v53  ;;  %v2903_v20 = vld [vmem:[#allocation5 + $0x740] ss:$16 sps:$4 sm:$0xff]   ;;  %v2908_v21 = vld [vmem:[#allocation5 + $0x524] ss:$16 sps:$4 sm:$0xff]  }
  0x79   :  { %1840 = vmatprep.mubr.bf16.mxu1 %v3334_v57 }
  0x7a   :  { %1770 = vmatpush1.bf16.msra.mxu0 %v2828_v22  ;;  %v2911_v22 = vld [vmem:[#allocation5 + $0x724] ss:$16 sps:$4 sm:$0xff]  }
  0x7b   :  { %1811 = vmatpush1.bf16.msra.mxu1 %v2831_v23  ;;  %1771 = vmatprep.subr.bf16.mxu0 %v2836_v24  ;;  %v2906_v23 = vld [vmem:[#allocation5 + $0x520] ss:$16 sps:$4 sm:$0xff]  }
  0x7c   :  { %1812 = vmatprep.subr.bf16.mxu1 %v2839_v25  ;;  %v2909_v24 = vld [vmem:[#allocation5 + $0x720] ss:$16 sps:$4 sm:$0xff]   ;;  %v2914_v25 = vld [vmem:[#allocation5 + $0x504] ss:$16 sps:$4 sm:$0xff]  }
  0x7e   :  { %1772 = vmatpush1.bf16.msra.mxu0 %v2834_v26  ;;  %v2917_v26 = vld [vmem:[#allocation5 + $0x704] ss:$16 sps:$4 sm:$0xff]  }
  0x7f   :  { %1813 = vmatpush1.bf16.msra.mxu1 %v2837_v27  ;;  %1773 = vmatprep.subr.bf16.mxu0 %v2842_v28  ;;  %v2912_v27 = vld [vmem:[#allocation5 + $0x500] ss:$16 sps:$4 sm:$0xff]  }
  0x80   :  { %1814 = vmatprep.subr.bf16.mxu1 %v2845_v29  ;;  %v2915_v28 = vld [vmem:[#allocation5 + $0x700] ss:$16 sps:$4 sm:$0xff]   ;;  %v2921_v29 = vld [vmem:[#allocation5 + $0xec] ss:$16 sps:$4 sm:$0xff]  }
  0x82   :  { %1774 = vmatpush1.bf16.msra.mxu0 %v2840_v30  ;;  %v2924_v30 = vld [vmem:[#allocation5 + $0x2ec] ss:$16 sps:$4 sm:$0xff]  }
  0x83   :  { %1815 = vmatpush1.bf16.msra.mxu1 %v2843_v31  ;;  %1775 = vmatprep.subr.bf16.mxu0 %v2848_v32  ;;  %v3340_v31 = vpack.c.bf16 %v3323_v44, %v3323_v44  ;;  %v3344_v32 = vpack.c.bf16 %v3328_v50, %v3328_v50  ;;  %v2939_v44 = vld [vmem:[#allocation5 + $0x8c] ss:$16 sps:$4 sm:$0xff]  }
  0x84   :  { %1816 = vmatprep.subr.bf16.mxu1 %v2851_v33  ;;  %v2919_v33 = vld [vmem:[#allocation5 + $0xe8] ss:$16 sps:$4 sm:$0xff]   ;;  %v2948_v50 = vld [vmem:[#allocation5 + $0x26c] ss:$16 sps:$4 sm:$0xff]  }
  0x86   :  { %1776 = vmatpush1.bf16.msra.mxu0 %v2846_v34  ;;  %v2922_v34 = vld [vmem:[#allocation5 + $0x2e8] ss:$16 sps:$4 sm:$0xff]  }
  0x87   :  { %1817 = vmatpush1.bf16.msra.mxu1 %v2849_v35  ;;  %1777 = vmatprep.subr.bf16.mxu0 %v2854_v36  ;;  %v2927_v35 = vld [vmem:[#allocation5 + $0xcc] ss:$16 sps:$4 sm:$0xff]  }
  0x88   :  { %1818 = vmatprep.subr.bf16.mxu1 %v2857_v37  ;;  %v2930_v36 = vld [vmem:[#allocation5 + $0x2cc] ss:$16 sps:$4 sm:$0xff]   ;;  %v2925_v37 = vld [vmem:[#allocation5 + $0xc8] ss:$16 sps:$4 sm:$0xff]  }
  0x8a   :  { %1778 = vmatpush1.bf16.msra.mxu0 %v2852_v38  ;;  %v2928_v38 = vld [vmem:[#allocation5 + $0x2c8] ss:$16 sps:$4 sm:$0xff]  }
  0x8b   :  { %1819 = vmatpush1.bf16.msra.mxu1 %v2855_v39  ;;  %1779 = vmatprep.subr.bf16.mxu0 %v2860_v40  ;;  %v2933_v39 = vld [vmem:[#allocation5 + $0xac] ss:$16 sps:$4 sm:$0xff]  }
  0x8c   :  { %1820 = vmatprep.subr.bf16.mxu1 %v2863_v41  ;;  %v2936_v40 = vld [vmem:[#allocation5 + $0x2ac] ss:$16 sps:$4 sm:$0xff]   ;;  %v2931_v41 = vld [vmem:[#allocation5 + $0xa8] ss:$16 sps:$4 sm:$0xff]  }
  0x8e   :  { %1780 = vmatpush1.bf16.msra.mxu0 %v2858_v46  ;;  %v2937_v46 = vld [vmem:[#allocation5 + $0x88] ss:$16 sps:$4 sm:$0xff]  }
  0x8f   :  { %1821 = vmatpush1.bf16.msra.mxu1 %v2861_v47  ;;  %1781 = vmatprep.subr.bf16.mxu0 %v2866_v51  ;;  %v2940_v47 = vld [vmem:[#allocation5 + $0x288] ss:$16 sps:$4 sm:$0xff]   ;;  %v2951_v51 = vld [vmem:[#allocation5 + $0x4c] ss:$16 sps:$4 sm:$0xff]  }
  0x90   :  { %1822 = vmatprep.subr.bf16.mxu1 %v2869_v52  ;;  %v2954_v52 = vld [vmem:[#allocation5 + $0x24c] ss:$16 sps:$4 sm:$0xff]  }
  0x92   :  { %1782 = vmatpush1.bf16.msra.mxu0 %v2864_v55  ;;  %v2952_v55 = vld [vmem:[#allocation5 + $0x248] ss:$16 sps:$4 sm:$0xff]  }
  0x93   :  { %1823 = vmatpush1.bf16.msra.mxu1 %v2867_v56  ;;  %1783 = vmatprep.subr.bf16.mxu0 %v2872_v58  ;;  %v2957_v56 = vld [vmem:[#allocation5 + $0x2c] ss:$16 sps:$4 sm:$0xff]  }
  0x94   :  { %1824 = vmatprep.subr.bf16.mxu1 %v2875_v49  ;;  %v2960_v58 = vld [vmem:[#allocation5 + $0x22c] ss:$16 sps:$4 sm:$0xff]   ;;  %v2955_v49 = vld [vmem:[#allocation5 + $0x28] ss:$16 sps:$4 sm:$0xff]  }
  0x96   :  { %1784 = vmatpush2.bf16.msra.mxu0 %v2870_v59  ;;  %v2958_v59 = vld [vmem:[#allocation5 + $0x228] ss:$16 sps:$4 sm:$0xff]  }
  0x97   :  { %1825 = vmatpush2.bf16.msra.mxu1 %v2873_v60  ;;  %1785 = vmatprep.subr.bf16.mxu0 %v2878_v61  ;;  %v2963_v60 = vld [vmem:[#allocation5 + $0xc] ss:$16 sps:$4 sm:$0xff]  }
  0x98   :  { %1826 = vmatprep.subr.bf16.mxu1 %v2881_v63  ;;  %v2966_v61 = vld [vmem:[#allocation5 + $0x20c] ss:$16 sps:$4 sm:$0xff]   ;;  %v2961_v63 = vld [vmem:[#allocation5 + $0x8] ss:$16 sps:$4 sm:$0xff]  }
  0x9a   :  { %1786 = vmatpush2.bf16.msra.mxu0 %v2876_v0  ;;  %v2964_v0 = vld [vmem:[#allocation5 + $0x208] ss:$16 sps:$4 sm:$0xff]  }
  0x9b   :  { %1827 = vmatpush2.bf16.msra.mxu1 %v2879_v1  ;;  %1787 = vmatprep.subr.bf16.mxu0 %v2884_v2  ;;  %v2969_v1 = vld [vmem:[#allocation5 + $0x1ec] ss:$16 sps:$4 sm:$0xff]  }
  0x9c   :  { %1828 = vmatprep.subr.bf16.mxu1 %v2887_v4  ;;  %v2972_v2 = vld [vmem:[#allocation5 + $0x3ec] ss:$16 sps:$4 sm:$0xff]   ;;  %v2967_v4 = vld [vmem:[#allocation5 + $0x1e8] ss:$16 sps:$4 sm:$0xff]  }
  0x9e   :  { %1788 = vmatpush2.bf16.msra.mxu0 %v2882_v5  ;;  %v2970_v5 = vld [vmem:[#allocation5 + $0x3e8] ss:$16 sps:$4 sm:$0xff]  }
  0x9f   :  { %1829 = vmatpush2.bf16.msra.mxu1 %v2885_v6  ;;  %1789 = vmatprep.subr.bf16.mxu0 %v2890_v7  ;;  %v2975_v6 = vld [vmem:[#allocation5 + $0x1cc] ss:$16 sps:$4 sm:$0xff]  }
  0xa0   :  { %1830 = vmatprep.subr.bf16.mxu1 %v2893_v8  ;;  %v2978_v7 = vld [vmem:[#allocation5 + $0x3cc] ss:$16 sps:$4 sm:$0xff]   ;;  %v2973_v8 = vld [vmem:[#allocation5 + $0x1c8] ss:$16 sps:$4 sm:$0xff]  }
  0xa2   :  { %1790 = vmatpush2.bf16.msra.mxu0 %v2888_v9  ;;  %v2976_v9 = vld [vmem:[#allocation5 + $0x3c8] ss:$16 sps:$4 sm:$0xff]  }
  0xa3   :  { %1831 = vmatpush2.bf16.msra.mxu1 %v2891_v10  ;;  %1791 = vmatprep.subr.bf16.mxu0 %v2896_v11  ;;  %v2981_v10 = vld [vmem:[#allocation5 + $0x1ac] ss:$16 sps:$4 sm:$0xff]  }
  0xa4   :  { %1832 = vmatprep.subr.bf16.mxu1 %v2899_v12  ;;  %v2984_v11 = vld [vmem:[#allocation5 + $0x3ac] ss:$16 sps:$4 sm:$0xff]   ;;  %v2979_v12 = vld [vmem:[#allocation5 + $0x1a8] ss:$16 sps:$4 sm:$0xff]  }
  0xa6   :  { %1792 = vmatpush2.bf16.msra.mxu0 %v2894_v13  ;;  %v2982_v13 = vld [vmem:[#allocation5 + $0x3a8] ss:$16 sps:$4 sm:$0xff]  }
  0xa7   :  { %1833 = vmatpush2.bf16.msra.mxu1 %v2897_v14  ;;  %1793 = vmatprep.subr.bf16.mxu0 %v2902_v15  ;;  %v2987_v14 = vld [vmem:[#allocation5 + $0x18c] ss:$16 sps:$4 sm:$0xff]  }
  0xa8   :  { %1834 = vmatprep.subr.bf16.mxu1 %v2905_v18  ;;  %v2990_v15 = vld [vmem:[#allocation5 + $0x38c] ss:$16 sps:$4 sm:$0xff]   ;;  %v2985_v18 = vld [vmem:[#allocation5 + $0x188] ss:$16 sps:$4 sm:$0xff]  }
  0xaa   :  { %1794 = vmatpush2.bf16.msra.mxu0 %v2900_v19  ;;  %v2988_v19 = vld [vmem:[#allocation5 + $0x388] ss:$16 sps:$4 sm:$0xff]  }
  0xab   :  { %1835 = vmatpush2.bf16.msra.mxu1 %v2903_v20  ;;  %1795 = vmatprep.subr.bf16.mxu0 %v2908_v21  ;;  %v2993_v20 = vld [vmem:[#allocation5 + $0x16c] ss:$16 sps:$4 sm:$0xff]  }
  0xac   :  { %1836 = vmatprep.subr.bf16.mxu1 %v2911_v22  ;;  %v2996_v21 = vld [vmem:[#allocation5 + $0x36c] ss:$16 sps:$4 sm:$0xff]   ;;  %v2991_v22 = vld [vmem:[#allocation5 + $0x168] ss:$16 sps:$4 sm:$0xff]  }
  0xae   :  { %1796 = vmatpush2.bf16.msra.mxu0 %v2906_v23  ;;  %v2994_v23 = vld [vmem:[#allocation5 + $0x368] ss:$16 sps:$4 sm:$0xff]  }
  0xaf   :  { %1837 = vmatpush2.bf16.msra.mxu1 %v2909_v24  ;;  %1797 = vmatprep.subr.bf16.mxu0 %v2914_v25  ;;  %v2999_v24 = vld [vmem:[#allocation5 + $0x14c] ss:$16 sps:$4 sm:$0xff]  }
  0xb0   :  { %1838 = vmatprep.subr.bf16.mxu1 %v2917_v26  ;;  %v3002_v25 = vld [vmem:[#allocation5 + $0x34c] ss:$16 sps:$4 sm:$0xff]   ;;  %v2997_v26 = vld [vmem:[#allocation5 + $0x148] ss:$16 sps:$4 sm:$0xff]  }
  0xb2   :  { %1798 = vmatpush2.bf16.msra.mxu0 %v2912_v27  ;;  %v3000_v27 = vld [vmem:[#allocation5 + $0x348] ss:$16 sps:$4 sm:$0xff]  }
  0xb3   :  { %1839 = vmatpush2.bf16.msra.mxu1 %v2915_v28  ;;  %1849 = vmatprep.subr.bf16.mxu0 %v2921_v29  ;;  %v3005_v28 = vld [vmem:[#allocation5 + $0x12c] ss:$16 sps:$4 sm:$0xff]  }
  0xb4   :  { %1890 = vmatprep.subr.bf16.mxu1 %v2924_v30  ;;  %v3008_v29 = vld [vmem:[#allocation5 + $0x32c] ss:$16 sps:$4 sm:$0xff]   ;;  %v3003_v30 = vld [vmem:[#allocation5 + $0x128] ss:$16 sps:$4 sm:$0xff]  }
  0xb5   :  { %1800 = vmatmul.mubr.bf16.vlgmr.msra.gmra.mxu0 %v3340_v31 }
  0xb6   :  { %1841 = vmatmul.mubr.bf16.vlgmr.msra.gmra.mxu1 %v3344_v32  ;;  %1850 = vmatpush1.bf16.msra.mxu0 %v2919_v33  ;;  %v3006_v33 = vld [vmem:[#allocation5 + $0x328] ss:$16 sps:$4 sm:$0xff]  }
  0xb7   :  { %1891 = vmatpush1.bf16.msra.mxu1 %v2922_v34  ;;  %1851 = vmatprep.subr.bf16.mxu0 %v2927_v35  ;;  %v3011_v34 = vld [vmem:[#allocation5 + $0x10c] ss:$16 sps:$4 sm:$0xff]  }
  0xb8   :  { %1892 = vmatprep.subr.bf16.mxu1 %v2930_v36  ;;  %1881 = vmatprep.mubr.bf16.mxu0 %v3310_v62  ;;  %v2943_v62 = vld [vmem:[#allocation5 + $0x68] ss:$16 sps:$4 sm:$0xff]   ;;  %v3014_v35 = vld [vmem:[#allocation5 + $0x30c] ss:$16 sps:$4 sm:$0xff]  }
  0xb9   :  { %1922 = vmatprep.mubr.bf16.mxu1 %v3312_v3  ;;  %v2946_v3 = vld [vmem:[#allocation5 + $0x268] ss:$16 sps:$4 sm:$0xff]  }
  0xba   :  { %1852 = vmatpush1.bf16.msra.mxu0 %v2925_v37  ;;  %v3009_v36 = vld [vmem:[#allocation5 + $0x108] ss:$16 sps:$4 sm:$0xff]  }
  0xbb   :  { %1893 = vmatpush1.bf16.msra.mxu1 %v2928_v38  ;;  %1853 = vmatprep.subr.bf16.mxu0 %v2933_v39  ;;  %v3012_v37 = vld [vmem:[#allocation5 + $0x308] ss:$16 sps:$4 sm:$0xff]   ;;  %v3017_v38 = vld [vmem:[#allocation5 + $0x4ec] ss:$16 sps:$4 sm:$0xff]  }
  0xbc   :  { %1894 = vmatprep.subr.bf16.mxu1 %v2936_v40  ;;  %v3020_v39 = vld [vmem:[#allocation5 + $0x6ec] ss:$16 sps:$4 sm:$0xff]   ;;  %v3015_v40 = vld [vmem:[#allocation5 + $0x4e8] ss:$16 sps:$4 sm:$0xff]  }
  0xbe   :  { %1854 = vmatpush1.bf16.msra.mxu0 %v2931_v41  ;;  %v3018_v41 = vld [vmem:[#allocation5 + $0x6e8] ss:$16 sps:$4 sm:$0xff]  }
  0xbf   :  { %1895 = vmatpush1.bf16.msra.mxu1 %v2934_v42  ;;  %1855 = vmatprep.subr.bf16.mxu0 %v2939_v44  ;;  %v3023_v42 = vld [vmem:[#allocation5 + $0x4cc] ss:$16 sps:$4 sm:$0xff]  }
  0xc0   :  { %1896 = vmatprep.subr.bf16.mxu1 %v2942_v45  ;;  %v3026_v44 = vld [vmem:[#allocation5 + $0x6cc] ss:$16 sps:$4 sm:$0xff]   ;;  %v3021_v45 = vld [vmem:[#allocation5 + $0x4c8] ss:$16 sps:$4 sm:$0xff]  }
  0xc2   :  { %1856 = vmatpush1.bf16.msra.mxu0 %v2937_v46  ;;  %v3024_v46 = vld [vmem:[#allocation5 + $0x6c8] ss:$16 sps:$4 sm:$0xff]  }
  0xc3   :  { %1897 = vmatpush1.bf16.msra.mxu1 %v2940_v47  ;;  %1857 = vmatprep.subr.bf16.mxu0 %v2945_v48  ;;  %v3029_v47 = vld [vmem:[#allocation5 + $0x4ac] ss:$16 sps:$4 sm:$0xff]  }
  0xc4   :  { %1898 = vmatprep.subr.bf16.mxu1 %v2948_v50  ;;  %v3032_v48 = vld [vmem:[#allocation5 + $0x6ac] ss:$16 sps:$4 sm:$0xff]   ;;  %v3027_v50 = vld [vmem:[#allocation5 + $0x4a8] ss:$16 sps:$4 sm:$0xff]  }
  0xc6   :  { %1858 = vmatpush1.bf16.msra.mxu0 %v2943_v62  ;;  %v3030_v62 = vld [vmem:[#allocation5 + $0x6a8] ss:$16 sps:$4 sm:$0xff]  }
  0xc7   :  { %1899 = vmatpush1.bf16.msra.mxu1 %v2946_v3  ;;  %1859 = vmatprep.subr.bf16.mxu0 %v2951_v51  ;;  %v3035_v3 = vld [vmem:[#allocation5 + $0x48c] ss:$16 sps:$4 sm:$0xff]   ;;  %v3036_v51 = vld [vmem:[#allocation5 + $0x688] ss:$16 sps:$4 sm:$0xff]  }
  0xc8   :  { %1900 = vmatprep.subr.bf16.mxu1 %v2954_v52  ;;  %v3041_v52 = vld [vmem:[#allocation5 + $0x46c] ss:$16 sps:$4 sm:$0xff]  }
  0xca   :  { %1860 = vmatpush1.bf16.msra.mxu0 %v2949_v54  ;;  %v3044_v54 = vld [vmem:[#allocation5 + $0x66c] ss:$16 sps:$4 sm:$0xff]  }
  0xcb   :  { %1901 = vmatpush1.bf16.msra.mxu1 %v2952_v55  ;;  %1861 = vmatprep.subr.bf16.mxu0 %v2957_v56  ;;  %v3047_v55 = vld [vmem:[#allocation5 + $0x44c] ss:$16 sps:$4 sm:$0xff]  }
  0xcc   :  { %1902 = vmatprep.subr.bf16.mxu1 %v2960_v58  ;;  %v3050_v56 = vld [vmem:[#allocation5 + $0x64c] ss:$16 sps:$4 sm:$0xff]   ;;  %v3045_v58 = vld [vmem:[#allocation5 + $0x448] ss:$16 sps:$4 sm:$0xff]  }
  0xce   :  { %1862 = vmatpush1.bf16.msra.mxu0 %v2955_v49  ;;  %v3048_v49 = vld [vmem:[#allocation5 + $0x648] ss:$16 sps:$4 sm:$0xff]  }
  0xcf   :  { %1903 = vmatpush1.bf16.msra.mxu1 %v2958_v59  ;;  %1863 = vmatprep.subr.bf16.mxu0 %v2963_v60  ;;  %v3053_v59 = vld [vmem:[#allocation5 + $0x42c] ss:$16 sps:$4 sm:$0xff]  }
  0xd0   :  { %1904 = vmatprep.subr.bf16.mxu1 %v2966_v61  ;;  %v3056_v60 = vld [vmem:[#allocation5 + $0x62c] ss:$16 sps:$4 sm:$0xff]   ;;  %v3051_v61 = vld [vmem:[#allocation5 + $0x428] ss:$16 sps:$4 sm:$0xff]  }
  0xd2   :  { %1864 = vmatpush1.bf16.msra.mxu0 %v2961_v63  ;;  %v3054_v63 = vld [vmem:[#allocation5 + $0x628] ss:$16 sps:$4 sm:$0xff]  }
  0xd3   :  { %1905 = vmatpush1.bf16.msra.mxu1 %v2964_v0  ;;  %1865 = vmatprep.subr.bf16.mxu0 %v2969_v1  ;;  %v3059_v0 = vld [vmem:[#allocation5 + $0x40c] ss:$16 sps:$4 sm:$0xff]  }
  0xd4   :  { %1906 = vmatprep.subr.bf16.mxu1 %v2972_v2  ;;  %v3062_v1 = vld [vmem:[#allocation5 + $0x60c] ss:$16 sps:$4 sm:$0xff]   ;;  %v3057_v2 = vld [vmem:[#allocation5 + $0x408] ss:$16 sps:$4 sm:$0xff]  }
  0xd6   :  { %1866 = vmatpush2.bf16.msra.mxu0 %v2967_v4  ;;  %v3060_v4 = vld [vmem:[#allocation5 + $0x608] ss:$16 sps:$4 sm:$0xff]  }
  0xd7   :  { %1907 = vmatpush2.bf16.msra.mxu1 %v2970_v5  ;;  %1867 = vmatprep.subr.bf16.mxu0 %v2975_v6  ;;  %v3065_v5 = vld [vmem:[#allocation5 + $0x5ec] ss:$16 sps:$4 sm:$0xff]  }
  0xd8   :  { %1908 = vmatprep.subr.bf16.mxu1 %v2978_v7  ;;  %v3068_v6 = vld [vmem:[#allocation5 + $0x7ec] ss:$16 sps:$4 sm:$0xff]   ;;  %v3063_v7 = vld [vmem:[#allocation5 + $0x5e8] ss:$16 sps:$4 sm:$0xff]  }
  0xda   :  { %1868 = vmatpush2.bf16.msra.mxu0 %v2973_v8  ;;  %v3066_v8 = vld [vmem:[#allocation5 + $0x7e8] ss:$16 sps:$4 sm:$0xff]  }
  0xdb   :  { %1909 = vmatpush2.bf16.msra.mxu1 %v2976_v9  ;;  %1869 = vmatprep.subr.bf16.mxu0 %v2981_v10  ;;  %v3071_v9 = vld [vmem:[#allocation5 + $0x5cc] ss:$16 sps:$4 sm:$0xff]  }
  0xdc   :  { %1910 = vmatprep.subr.bf16.mxu1 %v2984_v11  ;;  %v3074_v10 = vld [vmem:[#allocation5 + $0x7cc] ss:$16 sps:$4 sm:$0xff]   ;;  %v3069_v11 = vld [vmem:[#allocation5 + $0x5c8] ss:$16 sps:$4 sm:$0xff]  }
  0xde   :  { %1870 = vmatpush2.bf16.msra.mxu0 %v2979_v12  ;;  %v3072_v12 = vld [vmem:[#allocation5 + $0x7c8] ss:$16 sps:$4 sm:$0xff]  }
  0xdf   :  { %1911 = vmatpush2.bf16.msra.mxu1 %v2982_v13  ;;  %1871 = vmatprep.subr.bf16.mxu0 %v2987_v14  ;;  %v3077_v13 = vld [vmem:[#allocation5 + $0x5ac] ss:$16 sps:$4 sm:$0xff]  }
  0xe0   :  { %1912 = vmatprep.subr.bf16.mxu1 %v2990_v15  ;;  %v3080_v14 = vld [vmem:[#allocation5 + $0x7ac] ss:$16 sps:$4 sm:$0xff]   ;;  %v3075_v15 = vld [vmem:[#allocation5 + $0x5a8] ss:$16 sps:$4 sm:$0xff]  }
  0xe2   :  { %1872 = vmatpush2.bf16.msra.mxu0 %v2985_v18  ;;  %v3078_v18 = vld [vmem:[#allocation5 + $0x7a8] ss:$16 sps:$4 sm:$0xff]  }
  0xe3   :  { %1913 = vmatpush2.bf16.msra.mxu1 %v2988_v19  ;;  %1873 = vmatprep.subr.bf16.mxu0 %v2993_v20  ;;  %v3083_v19 = vld [vmem:[#allocation5 + $0x58c] ss:$16 sps:$4 sm:$0xff]  }
  0xe4   :  { %1914 = vmatprep.subr.bf16.mxu1 %v2996_v21  ;;  %v3086_v20 = vld [vmem:[#allocation5 + $0x78c] ss:$16 sps:$4 sm:$0xff]   ;;  %v3081_v21 = vld [vmem:[#allocation5 + $0x588] ss:$16 sps:$4 sm:$0xff]  }
  0xe6   :  { %1874 = vmatpush2.bf16.msra.mxu0 %v2991_v22  ;;  %v3084_v22 = vld [vmem:[#allocation5 + $0x788] ss:$16 sps:$4 sm:$0xff]  }
  0xe7   :  { %1915 = vmatpush2.bf16.msra.mxu1 %v2994_v23  ;;  %1875 = vmatprep.subr.bf16.mxu0 %v2999_v24  ;;  %v3089_v23 = vld [vmem:[#allocation5 + $0x56c] ss:$16 sps:$4 sm:$0xff]  }
  0xe8   :  { %1916 = vmatprep.subr.bf16.mxu1 %v3002_v25  ;;  %v3092_v24 = vld [vmem:[#allocation5 + $0x76c] ss:$16 sps:$4 sm:$0xff]   ;;  %v3087_v25 = vld [vmem:[#allocation5 + $0x568] ss:$16 sps:$4 sm:$0xff]  }
  0xea   :  { %1876 = vmatpush2.bf16.msra.mxu0 %v2997_v26  ;;  %v3090_v26 = vld [vmem:[#allocation5 + $0x768] ss:$16 sps:$4 sm:$0xff]  }
  0xeb   :  { %1917 = vmatpush2.bf16.msra.mxu1 %v3000_v27  ;;  %1877 = vmatprep.subr.bf16.mxu0 %v3005_v28  ;;  %v3095_v27 = vld [vmem:[#allocation5 + $0x54c] ss:$16 sps:$4 sm:$0xff]  }
  0xec   :  { %1918 = vmatprep.subr.bf16.mxu1 %v3008_v29  ;;  %v3098_v28 = vld [vmem:[#allocation5 + $0x74c] ss:$16 sps:$4 sm:$0xff]   ;;  %v3093_v29 = vld [vmem:[#allocation5 + $0x548] ss:$16 sps:$4 sm:$0xff]  }
  0xee   :  { %1878 = vmatpush2.bf16.msra.mxu0 %v3003_v30  ;;  %v3096_v30 = vld [vmem:[#allocation5 + $0x748] ss:$16 sps:$4 sm:$0xff]  }
  0xef   :  { %1919 = vmatpush2.bf16.msra.mxu1 %v3006_v33  ;;  %1879 = vmatprep.subr.bf16.mxu0 %v3011_v34  ;;  %v3101_v33 = vld [vmem:[#allocation5 + $0x52c] ss:$16 sps:$4 sm:$0xff]  }
  0xf0   :  { %1920 = vmatprep.subr.bf16.mxu1 %v3014_v35  ;;  %v3104_v34 = vld [vmem:[#allocation5 + $0x72c] ss:$16 sps:$4 sm:$0xff]   ;;  %v3099_v35 = vld [vmem:[#allocation5 + $0x528] ss:$16 sps:$4 sm:$0xff]  }
  0xf2   :  { %1880 = vmatpush2.bf16.msra.mxu0 %v3009_v36  ;;  %v3102_v36 = vld [vmem:[#allocation5 + $0x728] ss:$16 sps:$4 sm:$0xff]  }
  0xf3   :  { %1921 = vmatpush2.bf16.msra.mxu1 %v3012_v37  ;;  %1931 = vmatprep.subr.bf16.mxu0 %v3017_v38  ;;  %v3107_v37 = vld [vmem:[#allocation5 + $0x50c] ss:$16 sps:$4 sm:$0xff]  }
  0xf4   :  { %1972 = vmatprep.subr.bf16.mxu1 %v3020_v39  ;;  %v3110_v38 = vld [vmem:[#allocation5 + $0x70c] ss:$16 sps:$4 sm:$0xff]   ;;  %v3105_v39 = vld [vmem:[#allocation5 + $0x508] ss:$16 sps:$4 sm:$0xff]  }
  0xf5   :  { %1882 = vmatmul.mubr.bf16.vlgmr.msra.gmra.mxu0 %v3316_v16  ;;  %v3038_v16 = vld [vmem:[#allocation5 + $0x68c] ss:$16 sps:$4 sm:$0xff]  }
  0xf6   :  { %1923 = vmatmul.mubr.bf16.vlgmr.msra.gmra.mxu1 %v3318_v17  ;;  %1932 = vmatpush1.bf16.msra.mxu0 %v3015_v40  ;;  %v3033_v17 = vld [vmem:[#allocation5 + $0x488] ss:$16 sps:$4 sm:$0xff]  }
  0xf7   :  { %1973 = vmatpush1.bf16.msra.mxu1 %v3018_v41  ;;  %1933 = vmatprep.subr.bf16.mxu0 %v3023_v42  ;;  %v3108_v40 = vld [vmem:[#allocation5 + $0x708] ss:$16 sps:$4 sm:$0xff]   ;;  %v3111_v41 = vld [vmem:[#allocation8 + $0x78] sm:$0xff]  }
  0xf8   :  { %1974 = vmatprep.subr.bf16.mxu1 %v3026_v44  ;;  %1963 = vmatprep.mubr.bf16.mxu0 %v3330_v53  ;;  %v3039_v53 = vld [vmem:[#allocation5 + $0x468] ss:$16 sps:$4 sm:$0xff]   ;;  %v3112_v42 = vld [vmem:[#allocation8 + $0x38] sm:$0xff]  }
  0xf9   :  { %2004 = vmatprep.mubr.bf16.mxu1 %v3334_v57  ;;  %v3042_v57 = vld [vmem:[#allocation5 + $0x668] ss:$16 sps:$4 sm:$0xff]  }
  0xfa   :  { %1934 = vmatpush1.bf16.msra.mxu0 %v3021_v45  ;;  %v3113_v44 = vld [vmem:[#allocation8 + $0x70] sm:$0xff]  }
  0xfb   :  { %1975 = vmatpush1.bf16.msra.mxu1 %v3024_v46  ;;  %1935 = vmatprep.subr.bf16.mxu0 %v3029_v47  ;;  %v3114_v47 = vld [vmem:[#allocation8 + $0x30] sm:$0xff]  }
  0xfc   :  { %1976 = vmatprep.subr.bf16.mxu1 %v3032_v48 }
  0xfe   :  { %1936 = vmatpush1.bf16.msra.mxu0 %v3027_v50 }
  0xff   :  { %1977 = vmatpush1.bf16.msra.mxu1 %v3030_v62  ;;  %1937 = vmatprep.subr.bf16.mxu0 %v3035_v3  ;;  %v3115_v62 = vld [vmem:[#allocation8 + $0x68] sm:$0xff]  }
 0x100   :  { %1978 = vmatprep.subr.bf16.mxu1 %v3038_v16 }
 0x102   :  { %1938 = vmatpush1.bf16.msra.mxu0 %v3033_v17  ;;  %v3116_v17 = vld [vmem:[#allocation8 + $0x28] sm:$0xff]  }
 0x103   :  { %1979 = vmatpush1.bf16.msra.mxu1 %v3036_v51  ;;  %1939 = vmatprep.subr.bf16.mxu0 %v3041_v52  ;;  %v3117_v51 = vld [vmem:[#allocation8 + $0x60] sm:$0xff]  }
 0x104   :  { %1980 = vmatprep.subr.bf16.mxu1 %v3044_v54 }
 0x106   :  { %1940 = vmatpush1.bf16.msra.mxu0 %v3039_v53  ;;  %v3127_v53 = vld [vmem:[#allocation8 + $0xf8] sm:$0xff]  }
 0x107   :  { %1981 = vmatpush1.bf16.msra.mxu1 %v3042_v57  ;;  %1941 = vmatprep.subr.bf16.mxu0 %v3047_v55  ;;  %v3128_v57 = vld [vmem:[#allocation8 + $0xb8] sm:$0xff]   ;;  %v3130_v55 = vld [vmem:[#allocation8 + $0xb0] sm:$0xff]  }
 0x108   :  { %1982 = vmatprep.subr.bf16.mxu1 %v3050_v56  ;;  %v3119_v56 = vld [vmem:[#allocation8 + $0x58] sm:$0xff]  }
 0x10a   :  { %1942 = vmatpush1.bf16.msra.mxu0 %v3045_v58  ;;  %v3131_v58 = vld [vmem:[#allocation8 + $0xe8] sm:$0xff]  }
 0x10b   :  { %1983 = vmatpush1.bf16.msra.mxu1 %v3048_v49  ;;  %1943 = vmatprep.subr.bf16.mxu0 %v3053_v59  ;;  %v3120_v49 = vld [vmem:[#allocation8 + $0x18] sm:$0xff]   ;;  %v3132_v59 = vld [vmem:[#allocation8 + $0xa8] sm:$0xff]  }
 0x10c   :  { %1984 = vmatprep.subr.bf16.mxu1 %v3056_v60  ;;  %v3121_v60 = vld [vmem:[#allocation8 + $0x50] sm:$0xff]  }
 0x10e   :  { %1944 = vmatpush1.bf16.msra.mxu0 %v3051_v61  ;;  %v3133_v61 = vld [vmem:[#allocation8 + $0xe0] sm:$0xff]  }
 0x10f   :  { %1985 = vmatpush1.bf16.msra.mxu1 %v3054_v63  ;;  %1945 = vmatprep.subr.bf16.mxu0 %v3059_v0  ;;  %v3122_v63 = vld [vmem:[#allocation8 + $0x10] sm:$0xff]   ;;  %v3134_v0 = vld [vmem:[#allocation8 + $0xa0] sm:$0xff]  }
 0x110   :  { %1986 = vmatprep.subr.bf16.mxu1 %v3062_v1  ;;  %v3123_v1 = vld [vmem:[#allocation8 + $0x48] sm:$0xff]  }
 0x112   :  { %1946 = vmatpush1.bf16.msra.mxu0 %v3057_v2  ;;  %v3135_v2 = vld [vmem:[#allocation8 + $0xd8] sm:$0xff]  }
 0x113   :  { %1987 = vmatpush1.bf16.msra.mxu1 %v3060_v4  ;;  %1947 = vmatprep.subr.bf16.mxu0 %v3065_v5  ;;  %v3124_v4 = vld [vmem:[#allocation8 + $0x8] sm:$0xff]   ;;  %v3136_v5 = vld [vmem:[#allocation8 + $0x98] sm:$0xff]  }
 0x114   :  { %1988 = vmatprep.subr.bf16.mxu1 %v3068_v6  ;;  %v3125_v6 = vld [vmem:[#allocation8 + $0x40] sm:$0xff]  }
 0x116   :  { %1948 = vmatpush2.bf16.msra.mxu0 %v3063_v7  ;;  %v3126_v7 = vld [vmem:[#allocation8] sm:$0xff]  }
 0x117   :  { %1989 = vmatpush2.bf16.msra.mxu1 %v3066_v8  ;;  %1949 = vmatprep.subr.bf16.mxu0 %v3071_v9  ;;  %v387_v8 = vsub.s32 0, %v3303_v43  ;;  %v383_v9 = vld [vmem:[#allocation7] sm:$0xf] }
 0x118   :  { %1990 = vmatprep.subr.bf16.mxu1 %v3074_v10  ;;  %v391_v10 = vsub.s32 1, %v3303_v43 }
 0x11a   :  { %1950 = vmatpush2.bf16.msra.mxu0 %v3069_v11  ;;  %v388_v11 = vrot.slane %v383_v9, %v387_v8 }
 0x11b   :  { %1991 = vmatpush2.bf16.msra.mxu1 %v3072_v12  ;;  %1951 = vmatprep.subr.bf16.mxu0 %v3077_v13  ;;  %v392_v12 = vrot.slane %v383_v9, %v391_v10 }
 0x11c   :  { %1992 = vmatprep.subr.bf16.mxu1 %v3080_v14 }
 0x11e   :  { %1952 = vmatpush2.bf16.msra.mxu0 %v3075_v15  ;;  %v3137_v15 = vld [vmem:[#allocation8 + $0xd0] sm:$0xff]  }
 0x11f   :  { %1993 = vmatpush2.bf16.msra.mxu1 %v3078_v18  ;;  %1953 = vmatprep.subr.bf16.mxu0 %v3083_v19  ;;  %v3138_v19 = vld [vmem:[#allocation8 + $0x90] sm:$0xff]  }
 0x120   :  { %1994 = vmatprep.subr.bf16.mxu1 %v3086_v20 }
 0x122   :  { %1954 = vmatpush2.bf16.msra.mxu0 %v3081_v21 }
 0x123   :  { %1995 = vmatpush2.bf16.msra.mxu1 %v3084_v22  ;;  %1955 = vmatprep.subr.bf16.mxu0 %v3089_v23 }
 0x124   :  { %1996 = vmatprep.subr.bf16.mxu1 %v3092_v24 }
 0x126   :  { %1956 = vmatpush2.bf16.msra.mxu0 %v3087_v25 }
 0x127   :  { %1997 = vmatpush2.bf16.msra.mxu1 %v3090_v26  ;;  %1957 = vmatprep.subr.bf16.mxu0 %v3095_v27  ;;  %v3139_v26 = vld [vmem:[#allocation8 + $0xc8] sm:$0xff]  }
 0x128   :  { %1998 = vmatprep.subr.bf16.mxu1 %v3098_v28 }
 0x12a   :  { %1958 = vmatpush2.bf16.msra.mxu0 %v3093_v29  ;;  %v3140_v29 = vld [vmem:[#allocation8 + $0x88] sm:$0xff]  }
 0x12b   :  { %1999 = vmatpush2.bf16.msra.mxu1 %v3096_v30  ;;  %1959 = vmatprep.subr.bf16.mxu0 %v3101_v33 }
 0x12c   :  { %2000 = vmatprep.subr.bf16.mxu1 %v3104_v34 }
 0x12e   :  { %1960 = vmatpush2.bf16.msra.mxu0 %v3099_v35 }
 0x12f   :  { %2001 = vmatpush2.bf16.msra.mxu1 %v3102_v36  ;;  %1961 = vmatprep.subr.bf16.mxu0 %v3107_v37 }
 0x130   :  { %2002 = vmatprep.subr.bf16.mxu1 %v3110_v38  ;;  %v3141_v38 = vld [vmem:[#allocation8 + $0xc0] sm:$0xff]  }
 0x132   :  { %1962 = vmatpush2.bf16.msra.mxu0 %v3105_v39 }
 0x133   :  { %2003 = vmatpush2.bf16.msra.mxu1 %v3108_v40  ;;  %2671 = vmatprep.subr.bf16.mxu0 %v3111_v41  ;;  %v3142_v40 = vld [vmem:[#allocation8 + $0x80] sm:$0xff]  }
 0x134   :  { %2693 = vmatprep.subr.bf16.mxu1 %v3127_v53 }
 0x135   :  { %v3354_v45 = vpop.f32.mrf.mxu0  ;;  %1964 = vmatmul.mubr.bf16.vlgmr.msra.gmra.mxu0 %v3340_v31  ;;  %v3129_v31 = vld [vmem:[#allocation8 + $0xf0] sm:$0xff]  }
 0x136   :  { %v3356_v46 = vpop.f32.mrf.mxu1  ;;  %2005 = vmatmul.mubr.bf16.vlgmr.msra.gmra.mxu1 %v3344_v32  ;;  %2672 = vmatpush3.bf16.msra.mxu0 %v3112_v42  ;;  %v3118_v32 = vld [vmem:[#allocation8 + $0x20] sm:$0xff]   ;;  %v1720_v13 = vadd.f32 %v3354_v45, %v388_v11 }
 0x137   :  { %v1721_v48 = vpop.f32.mrf.mxu0  ;;  %2673 = vmatprep.subr.bf16.mxu0 %v3113_v44  ;;  %2694 = vmatpush3.bf16.msra.mxu1 %v3128_v57 }
 0x138   :  { %v3360_v50 = vpop.f32.mrf.mxu1  ;;  %2695 = vmatprep.subr.bf16.mxu1 %v3129_v31  ;;  %v1722_v14 = vadd.f32 %v1721_v48, %v392_v12  ;;  %v1761_v18 = vadd.f32 %v3356_v46, %v1720_v13  ;;  %v2638_v12 = vld [vmem:[%s3379_s4] ss:$0 sm:$0xff] }
 0x139   :  { %v1723_v3 = vpop.f32.mrf.mxu0 }
 0x13a   :  { %v1764_v16 = vpop.f32.mrf.mxu1  ;;  %2674 = vmatpush3.bf16.msra.mxu0 %v3114_v47  ;;  %v1763_v22 = vadd.f32 %v3360_v50, %v1722_v14 }
 0x13b   :  { %v1724_v52 = vpop.f32.mrf.mxu0  ;;  %2675 = vmatprep.subr.bf16.mxu0 %v3115_v62  ;;  %2696 = vmatpush3.bf16.msra.mxu1 %v3130_v55  ;;  %v395_v16 = vsub.s32 2, %v3303_v43 }
 0x13c   :  { %v1765_v54 = vpop.f32.mrf.mxu1  ;;  %2697 = vmatprep.subr.bf16.mxu1 %v3131_v58 }
 0x13e   :  { %2676 = vmatpush3.bf16.msra.mxu0 %v3116_v17  ;;  %v399_v17 = vsub.s32 3, %v3303_v43 }
 0x13f   :  { %2677 = vmatprep.subr.bf16.mxu0 %v3117_v51  ;;  %2698 = vmatpush3.bf16.msra.mxu1 %v3132_v59  ;;  %v396_v51 = vrot.slane %v383_v9, %v395_v16 }
 0x140   :  { %2699 = vmatprep.subr.bf16.mxu1 %v3133_v61  ;;  %v400_v52 = vrot.slane %v383_v9, %v399_v17 }
 0x142   :  { %2678 = vmatpush3.bf16.msra.mxu0 %v3118_v32 }
 0x143   :  { %2679 = vmatprep.subr.bf16.mxu0 %v3119_v56  ;;  %2700 = vmatpush3.bf16.msra.mxu1 %v3134_v0 }
 0x144   :  { %2701 = vmatprep.subr.bf16.mxu1 %v3135_v2 }
 0x146   :  { %2680 = vmatpush3.bf16.msra.mxu0 %v3120_v49 }
 0x147   :  { %2681 = vmatprep.subr.bf16.mxu0 %v3121_v60  ;;  %2702 = vmatpush3.bf16.msra.mxu1 %v3136_v5 }
 0x148   :  { %2703 = vmatprep.subr.bf16.mxu1 %v3137_v15 }
 0x14a   :  { %2682 = vmatpush3.bf16.msra.mxu0 %v3122_v63 }
 0x14b   :  { %2683 = vmatprep.subr.bf16.mxu0 %v3123_v1  ;;  %2704 = vmatpush3.bf16.msra.mxu1 %v3138_v19 }
 0x14c   :  { %2705 = vmatprep.subr.bf16.mxu1 %v3139_v26 }
 0x14e   :  { %2684 = vmatpush3.bf16.msra.mxu0 %v3124_v4 }
 0x14f   :  { %2685 = vmatprep.subr.bf16.mxu0 %v3125_v6  ;;  %2706 = vmatpush3.bf16.msra.mxu1 %v3140_v29 }
 0x150   :  { %2707 = vmatprep.subr.bf16.mxu1 %v3141_v38 }
 0x152   :  { %2686 = vmatpush3.bf16.msra.mxu0 %v3126_v7 }
 0x153   :  { %2708 = vmatpush3.bf16.msra.mxu1 %v3142_v40 }
 0x175   :  { %v1801_v20 = vpop.f32.mrf.mxu0 }
 0x176   :  { %v1842_v21 = vpop.f32.mrf.mxu1  ;;  %v1802_v23 = vadd.f32 %v1801_v20, %v1761_v18 }
 0x177   :  { %v1803_v24 = vpop.f32.mrf.mxu0 }
 0x178   :  { %v1844_v25 = vpop.f32.mrf.mxu1  ;;  %v1843_v27 = vadd.f32 %v1842_v21, %v1802_v23  ;;  %v1804_v28 = vadd.f32 %v1803_v24, %v1763_v22 }
 0x179   :  { %v1805_v30 = vpop.f32.mrf.mxu0 }
 0x17a   :  { %v1846_v33 = vpop.f32.mrf.mxu1  ;;  %v1845_v34 = vadd.f32 %v1844_v25, %v1804_v28  ;;  %v2013_v35 = vmax.f32 %v1843_v27, 0.0 }
 0x17b   :  { %v1806_v36 = vpop.f32.mrf.mxu0 }
 0x17c   :  { %v1847_v37 = vpop.f32.mrf.mxu1  ;;  %v2014_v39 = vmax.f32 %v1845_v34, 0.0  ;;  %v2017_v42 = vpack.c.bf16 %v2013_v35, %v2013_v35 }
 0x17e   :  { %v2018_v41 = vpack.c.bf16 %v2014_v39, %v2014_v39 }
 0x180   :  { %2316 = vmatprep.mubr.bf16.mxu0 %v2018_v41 }
 0x181   :  { %2317 = vmatmul.mubr.bf16.vlgmr.msra.gmra.mxu0 %v2017_v42 }
 0x1b5   :  { %v1883_v44 = vpop.f32.mrf.mxu0 }
 0x1b6   :  { %v1924_v45 = vpop.f32.mrf.mxu1  ;;  %v1884_v54 = vadd.f32 %v1883_v44, %v396_v51 }
 0x1b7   :  { %v1885_v46 = vpop.f32.mrf.mxu0 }
 0x1b8   :  { %v1926_v47 = vpop.f32.mrf.mxu1  ;;  %v1886_v53 = vadd.f32 %v1885_v46, %v400_v52  ;;  %v1925_v57 = vadd.f32 %v1924_v45, %v1884_v54 }
 0x1b9   :  { %v1887_v48 = vpop.f32.mrf.mxu0 }
 0x1ba   :  { %v1928_v50 = vpop.f32.mrf.mxu1  ;;  %v1927_v55 = vadd.f32 %v1926_v47, %v1886_v53 }
 0x1bb   :  { %v1888_v62 = vpop.f32.mrf.mxu0 }
 0x1bc   :  { %v1929_v3 = vpop.f32.mrf.mxu1 }
 0x1f5   :  { %v1965_v31 = vpop.f32.mrf.mxu0 }
 0x1f6   :  { %v2006_v32 = vpop.f32.mrf.mxu1  ;;  %v1966_v56 = vadd.f32 %v1965_v31, %v1925_v57 }
 0x1f7   :  { %v1967_v58 = vpop.f32.mrf.mxu0 }
 0x1f8   :  { %v2008_v49 = vpop.f32.mrf.mxu1  ;;  %v2007_v59 = vadd.f32 %v2006_v32, %v1966_v56  ;;  %v1968_v60 = vadd.f32 %v1967_v58, %v1927_v55 }
 0x1f9   :  { %v1969_v61 = vpop.f32.mrf.mxu0 }
 0x1fa   :  { %v2010_v63 = vpop.f32.mrf.mxu1  ;;  %v2009_v0 = vadd.f32 %v2008_v49, %v1968_v60  ;;  %v2015_v1 = vmax.f32 %v2007_v59, 0.0 }
 0x1fb   :  { %v1970_v2 = vpop.f32.mrf.mxu0 }
 0x1fc   :  { %v2011_v4 = vpop.f32.mrf.mxu1  ;;  %v2016_v43 = vmax.f32 %v2009_v0, 0.0  ;;  %v2019_v6 = vpack.c.bf16 %v2015_v1, %v2015_v1 }
 0x1fe   :  { %v2020_v5 = vpack.c.bf16 %v2016_v43, %v2016_v43 }
 0x200   :  { %2356 = vmatprep.mubr.bf16.mxu1 %v2020_v5 }
 0x201   :  { %2357 = vmatmul.mubr.bf16.vlgmr.msra.gmra.mxu1 %v2019_v6 }
 0x241   :  { %v2687_v7 = vpop.f32.mrf.mxu0 }
 0x243   :  { %v2688_v8 = vpop.f32.mrf.mxu0 }
 0x244   :  { %v2689_v9 = vadd.f32 %v2688_v8, %v2687_v7 }
 0x245   :  { %v2690_v10 = vpop.f32.mrf.mxu0 }
 0x246   :  { %v2319_v15 = vadd.f32 %v2689_v9, %v2638_v12 }
 0x247   :  { %v2691_v11 = vpop.f32.mrf.mxu0 }
 0x2c1   :  { %v2709_v13 = vpop.f32.mrf.mxu1 }
 0x2c3   :  { %v2710_v14 = vpop.f32.mrf.mxu1 }
 0x2c4   :  { %v2711_v18 = vadd.f32 %v2710_v14, %v2709_v13 }
 0x2c5   :  { %v2712_v19 = vpop.f32.mrf.mxu1 }
 0x2c6   :  { %v2359_v20 = vadd.f32 %v2711_v18, %v2319_v15 }
 0x2c7   :  { %v2713_v21 = vpop.f32.mrf.mxu1 }
 0x2c8   :  { %2364 = vst [vmem:[#allocation10] sm:$0x3] %v2359_v20 }
 0x2c9   :  { %3234 = shalt.err (!%p3231_p10)
}
 0x2ca   :  { %2374 = dma.vmem_to_hbm [thread:$0]  %s2372_s16, 32, %s3380_s5, [#allocation4]  }
 0x2cb   :  { %3249 = dma.done.wait [#allocation4], 32  }
 0x2cc   :  { %3250 = vsyncadd [#allocation4], 4294967264 }
 0x2cd   :  { %2378 = vsyncpa [#allocation3], 1 }
 0x2ce   :  { %2379 = vsyncpa [#allocation6], 1 }
 0x2cf   :  { %2380 = vsyncpa [#allocation9], 1 }
 0x2d0   :  { %2381 = vsyncpa [#allocation4], 1 }

</bundles_post_ra>
